<compile_context>
chip_gen: v6e
topology: v6e:2x2x1
jax: 0.10.0
libtpu: 0.0.40
codegen_flags: <defaults>
</compile_context>

<pallas_src>
import jax
import jax.numpy as jnp
from jax.experimental import pallas as pl
from jax.experimental.pallas import tpu as pltpu


_MAX_TILE_B = 32 * 1024  # lanes per grid step (see VMEM note above)


def mlp_kernel(x_ref, w1_ref, b1_ref, w2_ref, b2_ref, w3t_ref, b3_ref, o_ref):
    x = x_ref[...]                         # (2, TB)   batch on lanes
    w1 = w1_ref[...]                       # (16, 2)

    # Layer 1 (K=2): two broadcast-FMAs on the VPU; MXU would be ~0% utilized.
    t1 = jnp.tanh(b1_ref[...] + w1[:, 0:1] * x[0:1, :] + w1[:, 1:2] * x[1:2, :])

    # Layer 2 (16x16): MXU matmul with f32 accumulation.
    t2 = jnp.tanh(
        jnp.dot(w2_ref[...], t1, preferred_element_type=jnp.float32) + b2_ref[...]
    )

    # Layer 3 (16 -> 1): elementwise multiply + sublane reduce (XLU), then tanh.
    o_ref[...] = jnp.tanh(
        jnp.sum(w3t_ref[...] * t2, axis=0, keepdims=True) + b3_ref[...]
    )


def _fold_params(params):
    """Fold sigmoid(z) = 0.5*tanh(0.5*z) + 0.5 into the weights/biases so the
    kernel only evaluates tanh(affine) three times.  Exact in f32."""
    w1, b1, w2, b2, w3, b3 = [jnp.asarray(p, jnp.float32) for p in params]
    l1, l2 = w1.shape[0], w2.shape[0]
    w1p = 0.5 * w1                                                   # (l1, 2)
    b1p = (0.5 * b1).reshape(l1, 1)
    w2p = 0.25 * w2                                                  # (l2, l1)
    b2p = (0.5 * b2 + 0.25 * jnp.sum(w2, axis=1)).reshape(l2, 1)
    w3t = (0.5 * w3).reshape(l2, 1)                                  # W3' as column
    b3p = (b3 + 0.5 * jnp.sum(w3, axis=1)).reshape(1, 1)
    return w1p, b1p, w2p, b2p, w3t, b3p


def _pick_tile_b(batch):
    padded = pl.cdiv(batch, 128) * 128
    if padded < 256:
        return padded                       # single tiny tile
    # Aim for >= 2 grid steps so the "parallel" batch axis shards across both
    # TensorCores on v7x; cap so per-step VMEM stays small on every gen.
    half = pl.cdiv(padded, 2 * 128) * 128
    return min(half, _MAX_TILE_B)


def mc_control_nn_forward_feature_major(x_fm, params, tile_b=None):
    """Preferred entry point: x_fm is [2, B] float32 (batch on the fast axis),
    returns [1, B] float32.  Avoids any wrapper-side transpose HBM round trip.
    """
    n_in, batch = x_fm.shape
    assert n_in == 2, "MC_Control_NN expects 2 input features"
    w1p, b1p, w2p, b2p, w3t, b3p = _fold_params(params)
    l1, l2 = w1p.shape[0], w2p.shape[0]

    if tile_b is None:
        tile_b = _pick_tile_b(batch)
    num_tiles = pl.cdiv(batch, tile_b)
    padded_b = num_tiles * tile_b

    x_p = x_fm.astype(jnp.float32)
    if padded_b != batch:
        x_p = jnp.pad(x_p, ((0, 0), (0, padded_b - batch)))

    const = lambda i: (0, 0)  # weights/biases stay VMEM-resident across tiles
    out = pl.pallas_call(
        mlp_kernel,
        out_shape=jax.ShapeDtypeStruct((1, padded_b), jnp.float32),
        grid=(num_tiles,),
        in_specs=[
            pl.BlockSpec((2, tile_b), lambda i: (0, i)),   # x (batch-tiled)
            pl.BlockSpec((l1, 2), const),                  # W1'
            pl.BlockSpec((l1, 1), const),                  # b1'
            pl.BlockSpec((l2, l1), const),                 # W2'
            pl.BlockSpec((l2, 1), const),                  # b2'
            pl.BlockSpec((l2, 1), const),                  # W3'^T (column)
            pl.BlockSpec((1, 1), const),                   # b3'
        ],
        out_specs=pl.BlockSpec((1, tile_b), lambda i: (0, i)),
        compiler_params=pltpu.CompilerParams(
            dimension_semantics=("parallel",),
        ),
    )(x_p, w1p, b1p, w2p, b2p, w3t, b3p)

    return out[:, :batch]


def mc_control_nn_forward(x, params, tile_b=None):
    """PyTorch-compatible interface: x [B, 2] float32 -> [B, 1] float32.

    Prefer mc_control_nn_forward_feature_major upstream to skip the transpose.
    """
    out_fm = mc_control_nn_forward_feature_major(x.T, params, tile_b)
    return out_fm.T


def init_params(key, layer_1_size=16, layer_2_size=16):
    """PyTorch-layout init: W ~ U(-1/sqrt(fan_in), +) with shape [out, in], b [out]."""
    dims = [(2, layer_1_size), (layer_1_size, layer_2_size), (layer_2_size, 1)]
    params = []
    for fan_in, fan_out in dims:
        key, kw, kb = jax.random.split(key, 3)
        bound = 1.0 / jnp.sqrt(fan_in)
        w = jax.random.uniform(kw, (fan_out, fan_in), jnp.float32, -bound, bound)
        b = jax.random.uniform(kb, (fan_out,), jnp.float32, -bound, bound)
        params += [w, b]
    return tuple(params)


def reference_forward(x, params):
    w1, b1, w2, b2, w3, b3 = params
    h = jax.nn.sigmoid(x @ w1.T + b1)
    h = jax.nn.sigmoid(h @ w2.T + b2)
    return jnp.tanh(h @ w3.T + b3)


if __name__ == "__main__":
    key = jax.random.PRNGKey(0)
    k_x, k_x2, k_p = jax.random.split(key, 3)

    params = init_params(k_p, layer_1_size=16, layer_2_size=16)

    # 1) PyTorch-layout interface, single-tile path.
    B = 8
    x = jax.random.normal(k_x, (B, 2), jnp.float32)
    out = jax.block_until_ready(mc_control_nn_forward(x, params))
    ref = reference_forward(x, params)
    assert out.shape == (B, 1)
    assert jnp.allclose(out, ref, atol=1e-5, rtol=1e-5)

    # 2) Feature-major interface, multi-tile (2-step grid) + batch-padding path.
    B2 = 300
    x2 = jax.random.normal(k_x2, (B2, 2), jnp.float32)
    out2 = jax.block_until_ready(
        mc_control_nn_forward_feature_major(x2.T, params)
    )
    ref2 = reference_forward(x2, params)
    assert out2.shape == (1, B2)
    assert jnp.allclose(out2.T, ref2, atol=1e-5, rtol=1e-5)

    print("KERNEL_OK")
</pallas_src>

<mosaic_0001>
module attributes {stable_mosaic.version = 11 : i64} {
  func.func @mlp_kernel(%arg0: i32, %arg1: memref<2x128xf32, #tpu.memory_space<vmem>>, %arg2: memref<16x2xf32, #tpu.memory_space<vmem>>, %arg3: memref<16x1xf32, #tpu.memory_space<vmem>>, %arg4: memref<16x16xf32, #tpu.memory_space<vmem>>, %arg5: memref<16x1xf32, #tpu.memory_space<vmem>>, %arg6: memref<16x1xf32, #tpu.memory_space<vmem>>, %arg7: memref<1x1xf32, #tpu.memory_space<vmem>>, %arg8: memref<1x128xf32, #tpu.memory_space<vmem>>) attributes {dimension_semantics = [#tpu.dimension_semantics<parallel>], iteration_bounds = array<i64: 1>, scalar_prefetch = 0 : i64, scratch_operands = 0 : i64, tpu.core_type = #tpu.core_type<tc>, window_params = [{transform_indices = @transform_0, window_bounds = array<i64: 2, 128>}, {pipeline_mode = #tpu.pipeline_mode<synchronous>, transform_indices = @transform_1, window_bounds = array<i64: 16, 2>}, {pipeline_mode = #tpu.pipeline_mode<synchronous>, transform_indices = @transform_2, window_bounds = array<i64: 16, 1>}, {pipeline_mode = #tpu.pipeline_mode<synchronous>, transform_indices = @transform_3, window_bounds = array<i64: 16, 16>}, {pipeline_mode = #tpu.pipeline_mode<synchronous>, transform_indices = @transform_4, window_bounds = array<i64: 16, 1>}, {pipeline_mode = #tpu.pipeline_mode<synchronous>, transform_indices = @transform_5, window_bounds = array<i64: 16, 1>}, {pipeline_mode = #tpu.pipeline_mode<synchronous>, transform_indices = @transform_6, window_bounds = array<i64: 1, 1>}, {transform_indices = @transform_7, window_bounds = array<i64: 1, 128>}]} {
    %c0 = arith.constant 0 : index
    %c0_0 = arith.constant 0 : index
    %0 = vector.load %arg1[%c0, %c0_0] : memref<2x128xf32, #tpu.memory_space<vmem>>, vector<2x128xf32>
    %c0_1 = arith.constant 0 : index
    %c0_2 = arith.constant 0 : index
    %1 = vector.load %arg2[%c0_1, %c0_2] : memref<16x2xf32, #tpu.memory_space<vmem>>, vector<16x2xf32>
    %c0_3 = arith.constant 0 : index
    %c0_4 = arith.constant 0 : index
    %2 = vector.load %arg3[%c0_3, %c0_4] : memref<16x1xf32, #tpu.memory_space<vmem>>, vector<16x1xf32>
    %3 = vector.extract_strided_slice %1 {offsets = [0, 0], sizes = [16, 1], strides = [1, 1]} : vector<16x2xf32> to vector<16x1xf32>
    %4 = vector.extract_strided_slice %0 {offsets = [0, 0], sizes = [1, 128], strides = [1, 1]} : vector<2x128xf32> to vector<1x128xf32>
    %5 = vector.broadcast %3 : vector<16x1xf32> to vector<16x128xf32>
    %6 = vector.broadcast %4 : vector<1x128xf32> to vector<16x128xf32>
    %7 = arith.mulf %5, %6 : vector<16x128xf32>
    %8 = vector.broadcast %2 : vector<16x1xf32> to vector<16x128xf32>
    %9 = arith.addf %8, %7 : vector<16x128xf32>
    %10 = vector.extract_strided_slice %1 {offsets = [0, 1], sizes = [16, 1], strides = [1, 1]} : vector<16x2xf32> to vector<16x1xf32>
    %11 = vector.extract_strided_slice %0 {offsets = [1, 0], sizes = [1, 128], strides = [1, 1]} : vector<2x128xf32> to vector<1x128xf32>
    %12 = vector.broadcast %10 : vector<16x1xf32> to vector<16x128xf32>
    %13 = vector.broadcast %11 : vector<1x128xf32> to vector<16x128xf32>
    %14 = arith.mulf %12, %13 : vector<16x128xf32>
    %15 = arith.addf %9, %14 : vector<16x128xf32>
    %16 = math.tanh %15 : vector<16x128xf32>
    %c0_5 = arith.constant 0 : index
    %c0_6 = arith.constant 0 : index
    %17 = vector.load %arg4[%c0_5, %c0_6] : memref<16x16xf32, #tpu.memory_space<vmem>>, vector<16x16xf32>
    %cst = arith.constant dense<0.000000e+00> : vector<16x128xf32>
    %18 = tpu.matmul %17, %16, %cst {dimension_numbers = #tpu.dot_dimension_numbers<[1], [0], [0], [1], [0, 0, 1, 1], [], []>} : vector<16x16xf32>, vector<16x128xf32>, vector<16x128xf32> -> vector<16x128xf32>
    %c0_7 = arith.constant 0 : index
    %c0_8 = arith.constant 0 : index
    %19 = vector.load %arg5[%c0_7, %c0_8] : memref<16x1xf32, #tpu.memory_space<vmem>>, vector<16x1xf32>
    %20 = vector.broadcast %19 : vector<16x1xf32> to vector<16x128xf32>
    %21 = arith.addf %18, %20 : vector<16x128xf32>
    %22 = math.tanh %21 : vector<16x128xf32>
    %c0_9 = arith.constant 0 : index
    %c0_10 = arith.constant 0 : index
    %23 = vector.load %arg6[%c0_9, %c0_10] : memref<16x1xf32, #tpu.memory_space<vmem>>, vector<16x1xf32>
    %24 = vector.broadcast %23 : vector<16x1xf32> to vector<16x128xf32>
    %25 = arith.mulf %24, %22 : vector<16x128xf32>
    %cst_11 = arith.constant dense<0.000000e+00> : vector<128xf32>
    %26 = vector.multi_reduction <add>, %25, %cst_11 [0] : vector<16x128xf32> to vector<128xf32>
    %27 = vector.shape_cast %26 : vector<128xf32> to vector<1x128xf32>
    %c0_12 = arith.constant 0 : index
    %c0_13 = arith.constant 0 : index
    %28 = vector.load %arg7[%c0_12, %c0_13] : memref<1x1xf32, #tpu.memory_space<vmem>>, vector<1x1xf32>
    %29 = vector.broadcast %28 : vector<1x1xf32> to vector<1x128xf32>
    %30 = arith.addf %27, %29 : vector<1x128xf32>
    %31 = math.tanh %30 : vector<1x128xf32>
    %c0_14 = arith.constant 0 : index
    %c0_15 = arith.constant 0 : index
    %32 = vector.load %arg8[%c0_14, %c0_15] : memref<1x128xf32, #tpu.memory_space<vmem>>, vector<1x128xf32>
    tpu.vector_store %arg8[%c0_14, %c0_15], %31 {strides = array<i32>} : memref<1x128xf32, #tpu.memory_space<vmem>>, vector<1x128xf32>,
    return
  }
  func.func @transform_0(%arg0: i32) -> (i32, i32) {
    %c0_i32 = arith.constant 0 : i32
    %c0_i32_0 = arith.constant 0 : i32
    return %c0_i32, %arg0 : i32, i32
  }
  func.func @transform_1(%arg0: i32) -> (i32, i32) {
    %c0_i32 = arith.constant 0 : i32
    %c0_i32_0 = arith.constant 0 : i32
    %c0_i32_1 = arith.constant 0 : i32
    return %c0_i32, %c0_i32_0 : i32, i32
  }
  func.func @transform_2(%arg0: i32) -> (i32, i32) {
    %c0_i32 = arith.constant 0 : i32
    %c0_i32_0 = arith.constant 0 : i32
    %c0_i32_1 = arith.constant 0 : i32
    return %c0_i32, %c0_i32_0 : i32, i32
  }
  func.func @transform_3(%arg0: i32) -> (i32, i32) {
    %c0_i32 = arith.constant 0 : i32
    %c0_i32_0 = arith.constant 0 : i32
    %c0_i32_1 = arith.constant 0 : i32
    return %c0_i32, %c0_i32_0 : i32, i32
  }
  func.func @transform_4(%arg0: i32) -> (i32, i32) {
    %c0_i32 = arith.constant 0 : i32
    %c0_i32_0 = arith.constant 0 : i32
    %c0_i32_1 = arith.constant 0 : i32
    return %c0_i32, %c0_i32_0 : i32, i32
  }
  func.func @transform_5(%arg0: i32) -> (i32, i32) {
    %c0_i32 = arith.constant 0 : i32
    %c0_i32_0 = arith.constant 0 : i32
    %c0_i32_1 = arith.constant 0 : i32
    return %c0_i32, %c0_i32_0 : i32, i32
  }
  func.func @transform_6(%arg0: i32) -> (i32, i32) {
    %c0_i32 = arith.constant 0 : i32
    %c0_i32_0 = arith.constant 0 : i32
    %c0_i32_1 = arith.constant 0 : i32
    return %c0_i32, %c0_i32_0 : i32, i32
  }
  func.func @transform_7(%arg0: i32) -> (i32, i32) {
    %c0_i32 = arith.constant 0 : i32
    %c0_i32_0 = arith.constant 0 : i32
    return %c0_i32, %arg0 : i32, i32
  }
}

</mosaic_0001>

<bundles_post_ra>
// kernel: tpu_custom_call.1
= control target key start
LH: loop header
LB: loop body
LE: loop exit
PB: predicated region body
PF: predicated region fallthrough
CT: control target
= control target key end

     0   :  { %s362_s0 = inlined_call_operand.vmem [shape: f32[2,128], index: 0, kind: input, shape index: {}]   ;;  %s363_s1 = inlined_call_operand.vmem [shape: f32[16,2], index: 1, kind: input, shape index: {}]   ;;  %s364_s2 = inlined_call_operand.vmem [shape: f32[16,1], index: 2, kind: input, shape index: {}]   ;;  %s365_s3 = inlined_call_operand.vmem [shape: f32[16,16], index: 3, kind: input, shape index: {}]   ;;  %s366_s4 = inlined_call_operand.vmem [shape: f32[16,1], index: 4, kind: input, shape index: {}]   ;;  %s367_s5 = inlined_call_operand.vmem [shape: f32[16,1], index: 5, kind: input, shape index: {}]   ;;  %s368_s6 = inlined_call_operand.<no memory space> [shape: f32[1,1], index: 6, kind: input, shape index: {}]   ;;  %s369_s7 = inlined_call_operand.hbm [shape: f32[1,128], index: 7, kind: output, shape index: {}]  }
   0x1   :  { %v12_v0 = vstv %s368_s6 }
   0x2   :  { %13 = vst [vmem:[#allocation2] sm:$0x1] %v12_v0 }
   0x3   :  { %v33_v1 = vld [vmem:[%s364_s2 + $0x8] sm:$0xff]  ;;  %v278_v3 = vmov 0   ;;  %v30_v4 = vld [vmem:[%s363_s1] sm:$0xff] }
   0x4   :  { %v31_v2 = vld [vmem:[%s363_s1 + $0x8] sm:$0xff]  ;;  %243 = vset.pattern.permute.xlu1 %v278_v3  ;;  %242 = vset.pattern.permute.xlu0 %v278_v3 }
   0x5   :  { %57 = vperm.xlu1 %243, %v33_v1   ;;  %41 = vperm.xlu0 %242, %v31_v2  }
   0x6   :  { %14 = vsyncpa [#allocation4], 0  ;;  %v279_v5 = vmov 1   ;;  %v32_v6 = vld [vmem:[%s364_s2] sm:$0xff]  ;;  %vm94_vm0 = vcmask 130048   ;;  %v83_v11 = vld [vmem:[%s366_s4 + $0x8] sm:$0xff]  ;;  %v44_v13 = vlaneseq }
   0x7   :  { %v82_v7 = vld [vmem:[%s366_s4] sm:$0xff]  ;;  %v179_v12 = vld [vmem:[%s367_s5 + $0x8] sm:$0xff] }
   0x8   :  { %v178_v8 = vld [vmem:[%s367_s5] sm:$0xff]  ;;  %v45_v14 = vshrl.u32 %v44_v13, 7  ;;  %v81_v36 = vld [vmem:[%s365_s3 + $0x8] sm:$0xff] }
   0x9   :  { %244 = vset.pattern.permute.xlu1 %v279_v5  ;;  %36 = vperm.xlu0 %242, %v30_v4   ;;  %v199_v9 = vld [vmem:[#allocation2] sm:$0x1] }
   0xa   :  { %67 = vperm.xlu1 %244, %v31_v2   ;;  %v80_v10 = vld [vmem:[%s365_s3] sm:$0xff]  ;;  %v46_v15 = vsub.s32 0, %v45_v14  ;;  %v72_v18 = vsub.s32 1, %v45_v14  ;;  %s280_s3 = smov [#allocation3]  }
   0xb   :  { %236 = vmatprep.mubr.msk.f32.mxu0 %vm94_vm0, %v80_v10  ;;  %v29_v16 = vld [vmem:[%s362_s0] sm:$0x3]  ;;  %s218_s5 = sshll.u32 %s280_s3, 4  ;;  %s219_s5 = int_to_ptr.vmem [resolvable:$true] %s218_s5 }
   0xc   :  { %v47_v17 = vrot.slane %v29_v16, %v46_v15  ;;  %v73_v22 = vrot.slane %v29_v16, %v72_v18  ;;  %s256_s20 = scalar_lea.vmem %s219_s5, 16  ;;  %s260_s21 = scalar_lea.vmem %s219_s5, 32 }
   0xd   :  { %52 = vperm.xlu0 %242, %v32_v6   ;;  %p257_p0 = scmp.ne.s32.totalorder %s219_s5, %s256_s20  ;;  %p261_p1 = scmp.lt.s32.totalorder %s219_s5, %s219_s5 }
   0xe   :  { %63 = vperm.xlu1 %244, %v30_v4   ;;  %p262_p2 = scmp.lt.s32.totalorder %s260_s21, %s256_s20 }
  0x10   :  { %p263_p3 = por %p262_p2, %p261_p1 }
  0x11   :  { %86 = vperm.xlu0 %242, %v82_v7  }
  0x12   :  { %245 = vset.pattern.permute.xlu1 %v278_v3  ;;  %p264_p4 = pnand %p263_p3, %p257_p0 }
  0x13   :  { %91 = vperm.xlu1 %245, %v83_v11  }
  0x15   :  { %182 = vperm.xlu0 %242, %v178_v8  }
  0x17   :  { %187 = vperm.xlu1 %245, %v179_v12  }
  0x19   :  { %202 = vperm.xlu0 %242, %v199_v9  }
  0x80   :  { %v58_v19 = vpop.permute.xlu1 %57  ;;  %v42_v20 = vpop.permute.xlu0 %41 }
  0x81   :  { %v49_v21 = vmul.f32 %v47_v17, %v42_v20 }
  0x83   :  { %v61_v25 = vadd.f32 %v58_v19, %v49_v21 }
  0x84   :  { %v37_v23 = vpop.permute.xlu0 %36 }
  0x85   :  { %v68_v24 = vpop.permute.xlu1 %67  ;;  %v48_v27 = vmul.f32 %v47_v17, %v37_v23 }
  0x86   :  { %v75_v26 = vmul.f32 %v73_v22, %v68_v24 }
  0x88   :  { %v77_v28 = vadd.f32 %v75_v26, %v61_v25  ;;  %v53_v29 = vpop.permute.xlu0 %52 }
  0x89   :  { %v60_v30 = vadd.f32 %v53_v29, %v48_v27  ;;  %v64_v31 = vpop.permute.xlu1 %63 }
  0x8a   :  { %246 = vtanh.f32 %v77_v28  ;;  %v74_v32 = vmul.f32 %v73_v22, %v64_v31 }
  0x8c   :  { %v76_v33 = vadd.f32 %v74_v32, %v60_v30  ;;  %v87_v40 = vpop.permute.xlu0 %86 }
  0x8e   :  { %248 = vtanh.f32 %v76_v33  ;;  %v92_v37 = vpop.permute.xlu1 %91 }
  0x90   :  { %v183_v45 = vpop.permute.xlu0 %182 }
  0x92   :  { %v188_v46 = vpop.permute.xlu1 %187 }
  0x94   :  { %v203_v54 = vpop.permute.xlu0 %202 }
  0x95   :  { %v208_v56 = vrot.slane %v203_v54, %v46_v15 }
  0x97   :  { %v247_v34 = vpop.eup %246 }
  0x98   :  { %232 = vmatprep.subr.mxu0 %v247_v34 }
  0x99   :  { %233 = vmatpush3.msra.mxu0 %v247_v34 }
  0x9b   :  { %v249_v35 = vpop.eup %248 }
  0x9c   :  { %234 = vmatprep.subr.mxu0 %v249_v35 }
  0x9d   :  { %235 = vmatpush3.msra.mxu0 %v249_v35 }
  0x9e   :  { %237 = vmatmul.mubr.msk.f32.vlgmr.msra.gmra.mxu0 %vm94_vm0, %v81_v36 }
 0x15e   :  { %v238_v38 = vpop.f32.mrf.mxu0 }
 0x15f   :  { %v173_v39 = vadd.f32 %v238_v38, %v92_v37 }
 0x160   :  { %v167_v41 = vpop.f32.mrf.mxu0 }
 0x161   :  { %250 = vtanh.f32 %v173_v39  ;;  %v168_v42 = vadd.f32 %v167_v41, %v87_v40 }
 0x163   :  { %252 = vtanh.f32 %v168_v42 }
 0x16e   :  { %v251_v43 = vpop.eup %250 }
 0x16f   :  { %v191_v47 = vmul.f32 %v251_v43, %v188_v46 }
 0x170   :  { %v253_v44 = vpop.eup %252 }
 0x171   :  { %v190_v48 = vmul.f32 %v253_v44, %v183_v45 }
 0x173   :  { %v192_v49 = vadd.f32 %v191_v47, %v190_v48 }
 0x175   :  { %v193_v50 = vrot.slane %v192_v49, 4 }
 0x177   :  { %v194_v51 = vadd.f32 %v193_v50, %v192_v49 }
 0x179   :  { %v195_v52 = vrot.slane %v194_v51, 2 }
 0x17b   :  { %v196_v53 = vadd.f32 %v195_v52, %v194_v51 }
 0x17d   :  { %v197_v55 = vrot.slane %v196_v53, 1 }
 0x17f   :  { %v198_v57 = vadd.f32 %v197_v55, %v196_v53 }
 0x181   :  { %v209_v58 = vadd.f32 %v208_v56, %v198_v57 }
 0x183   :  { %254 = vtanh.f32 %v209_v58 }
 0x190   :  { %v255_v59 = vpop.eup %254 }
 0x191   :  { %211 = vst [vmem:[#allocation3] sm:$0x1] %v255_v59 }
 0x192   :  { %267 = shalt.err (!%p264_p4)
}
 0x193   :  { %221 = dma.vmem_to_hbm [thread:$0]  %s219_s5, 16, %s369_s7, [#allocation4]  }
 0x194   :  { %276 = dma.done.wait [#allocation4], 16  }
 0x195   :  { %277 = vsyncadd [#allocation4], 4294967280 }
 0x196   :  { %225 = vsyncpa [#allocation4], 1 }

</bundles_post_ra>
